<compile_context>
chip_gen: v6e
topology: v6e:2x2x1
jax: 0.10.0
libtpu: 0.0.40
codegen_flags: <defaults>
</compile_context>

<pallas_src>
import functools
import math

import jax
import jax.numpy as jnp
from jax import lax
from jax.experimental import pallas as pl
from jax.experimental.pallas import tpu as pltpu

EPS = 1e-5  # torch.nn.BatchNorm1d default eps


def _round_up(x, m):
    return ((x + m - 1) // m) * m


# ------------------------------- kernels -------------------------------------


def _conv_tile(x_ref, w_ref, base, tl, k_taps, dil):
    """y[:, l] = sum_k W_k @ x_row[:, base + l + k*dil]  ->  (C_out_pad, tl) f32.

    x_ref block is the whole (1, C_in_pad, L_sub_pad) row for this batch
    element (fetched once per n; the block index does not change across the
    inner l-tile axis). Taps are K shifted contiguous slices of the row.
    """
    acc = None
    for k in range(k_taps):
        xk = x_ref[0, :, pl.ds(base + k * dil, tl)]            # (C_in_pad, tl)
        yk = jnp.dot(w_ref[k], xk, preferred_element_type=jnp.float32)
        acc = yk if acc is None else acc + yk
    return acc


def _stats_kernel(x_ref, w_ref, mean_ref, m2_ref, *, tl, k_taps, dil, l_out, jt):
    """Pass 1: per-tile BN statistics (mean, centered sum-of-squares)."""
    j = pl.program_id(1)
    base = pl.multiple_of(j * tl, 128) if jt > 1 else 0
    y = _conv_tile(x_ref, w_ref, base, tl, k_taps, dil)        # (C_out_pad, tl)

    # Mask output positions past L_out (they read zero-padded x tails or
    # partial windows and must not contaminate the batch statistics).
    col = lax.broadcasted_iota(jnp.int32, (1, tl), 1)
    if jt > 1:
        col = col + j * tl
    valid = (col < l_out).astype(jnp.float32)                  # (1, tl)
    cnt = jnp.sum(valid)                                       # >= 1 always

    mean_t = jnp.sum(y * valid, axis=1, keepdims=True) / cnt   # (C_out_pad, 1)
    yc = (y - mean_t) * valid                                  # centered, masked
    m2_t = jnp.sum(yc * yc, axis=1, keepdims=True)             # (C_out_pad, 1)

    mean_ref[0, 0] = mean_t
    m2_ref[0, 0] = m2_t


def _norm_kernel(x_ref, w_ref, affine_ref, o_ref, *, tl, k_taps, dil, jt):
    """Pass 2: recompute conv tile, apply BN affine + ReLU, lane-dense store."""
    j = pl.program_id(1)
    base = pl.multiple_of(j * tl, 128) if jt > 1 else 0
    y = _conv_tile(x_ref, w_ref, base, tl, k_taps, dil)        # (C_out_pad, tl)
    o_ref[0] = jnp.maximum(y * affine_ref[0] + affine_ref[1], 0.0).astype(o_ref.dtype)


# ------------------------------- wrapper --------------------------------------


def conv_block_forward(x, weight, gamma, beta, *, stride=2, padding=1,
                       dilation=2, compute_dtype=jnp.bfloat16, out_dtype=None,
                       tile_l=8192):
    N, C_in, L = x.shape
    C_out, _, K = weight.shape
    if out_dtype is None:
        out_dtype = compute_dtype
    L_out = (L + 2 * padding - dilation * (K - 1) - 1) // stride + 1

    # gcd trick: with stride=2, dilation=2 every tap position in the padded
    # input is even, so only the even lattice is ever read.
    g = math.gcd(stride, dilation)
    stride_g, dil_g = stride // g, dilation // g
    if stride_g != 1:
        # TODO(synk): strided lane reads for configs where stride//gcd != 1.
        raise NotImplementedError("requires stride // gcd(stride, dilation) == 1")

    C_in_pad = _round_up(C_in, 8)
    C_out_pad = _round_up(C_out, 8)
    cdt_b = jnp.dtype(compute_dtype).itemsize
    out_b = jnp.dtype(out_dtype).itemsize

    # Per-generation VMEM budget (instead of a fixed 32 MiB clamp):
    # ~96 MiB usable on v5e/v6e (128 MiB physical), ~48 MiB on v7x (64 MiB).
    try:
        vmem_cap = int(pltpu.get_tpu_info().vmem_capacity_bytes)
    except Exception:  # conservative fallback (v7x-sized)
        vmem_cap = 64 << 20
    budget = min(vmem_cap * 3 // 4, 100 << 20)

    # Lane tile over L_out: as large as the budget allows (amortizes the
    # ~0.35us per-grid-step overhead), capped by tile_l and by L_out itself.
    row_est = _round_up(L_out + (K - 1) * dil_g, 128) + _round_up(tile_l, 128)
    fixed = (2 * C_in_pad * row_est * cdt_b                    # x row, 2 bufs
             + 2 * K * C_out_pad * C_in_pad * cdt_b + (2 << 20))
    per_lane = C_out_pad * (2 * out_b + 16)                    # out tile + f32 temps
    tl_cap = 128
    if budget > fixed:
        tl_cap = max(128, ((budget - fixed) // per_lane) // 128 * 128)
    TL = min(_round_up(L_out, 128), _round_up(tile_l, 128), tl_cap)
    JT = -(-L_out // TL)
    L_out_pad = JT * TL

    L_sub_valid = (L + 2 * padding + g - 1) // g               # even-lattice length
    L_need = L_out_pad + (K - 1) * dil_g                       # max tap index + 1
    L_sub_pad = _round_up(max(L_need, L_sub_valid), 128)

    # --- glue (all O(|x|) and cheap): pad, gcd-subsample, cast, channel-pad ---
    x_pad = jnp.pad(x, ((0, 0), (0, 0), (padding, padding)))
    x_sub = x_pad[:, :, ::g].astype(compute_dtype)             # half of x for g=2
    x_sub = jnp.pad(x_sub, ((0, 0), (0, C_in_pad - C_in),
                            (0, L_sub_pad - x_sub.shape[-1])))

    w = jnp.transpose(weight, (2, 0, 1)).astype(compute_dtype)  # (K, C_out, C_in)
    w = jnp.pad(w, ((0, 0), (0, C_out_pad - C_out), (0, C_in_pad - C_in)))

    x_spec = pl.BlockSpec((1, C_in_pad, L_sub_pad), lambda n, j: (n, 0, 0))
    w_spec = pl.BlockSpec((K, C_out_pad, C_in_pad), lambda n, j: (0, 0, 0))
    stat_spec = pl.BlockSpec((1, 1, C_out_pad, 1), lambda n, j: (n, j, 0, 0))

    x_bytes = N * C_in_pad * L_sub_pad * cdt_b
    w_bytes = K * C_out_pad * C_in_pad * cdt_b
    flops = 2 * K * C_out_pad * C_in_pad * L_out_pad * N

    # --- pass 1: per-tile BN statistics (fully parallel; both TCs on v7x) ----
    mean_t, m2_t = pl.pallas_call(
        functools.partial(_stats_kernel, tl=TL, k_taps=K, dil=dil_g,
                          l_out=L_out, jt=JT),
        grid=(N, JT),
        in_specs=[x_spec, w_spec],
        out_specs=[stat_spec, stat_spec],
        out_shape=[jax.ShapeDtypeStruct((N, JT, C_out_pad, 1), jnp.float32)] * 2,
        compiler_params=pltpu.CompilerParams(
            dimension_semantics=("parallel", "parallel"),
            vmem_limit_bytes=budget),
        cost_estimate=pl.CostEstimate(
            flops=flops, transcendentals=0,
            bytes_accessed=x_bytes + w_bytes + 2 * N * JT * C_out_pad * 4),
    )(x_sub, w)

    # --- tiny wrapper reduction: Chan-style merge of per-tile (mean, M2) -----
    cnt = jnp.clip(L_out - jnp.arange(JT) * TL, 0, TL).astype(jnp.float32)
    cnt = cnt[None, :, None, None]                             # (1, JT, 1, 1)
    total = float(N * L_out)
    mean = jnp.sum(cnt * mean_t, axis=(0, 1)) / total          # (C_out_pad, 1)
    m2 = (jnp.sum(m2_t, axis=(0, 1))
          + jnp.sum(cnt * jnp.square(mean_t - mean), axis=(0, 1)))
    var = m2 / total                                           # biased (BN training)
    gamma_p = jnp.pad(gamma.astype(jnp.float32),
                      (0, C_out_pad - C_out)).reshape(C_out_pad, 1)
    beta_p = jnp.pad(beta.astype(jnp.float32),
                     (0, C_out_pad - C_out)).reshape(C_out_pad, 1)
    scale = gamma_p * lax.rsqrt(var + EPS)
    shift = beta_p - mean * scale
    affine = jnp.stack([scale, shift], axis=0)                 # (2, C_out_pad, 1)

    # --- pass 2: conv + BN affine + ReLU, stored directly in NCL layout ------
    out = pl.pallas_call(
        functools.partial(_norm_kernel, tl=TL, k_taps=K, dil=dil_g, jt=JT),
        grid=(N, JT),
        in_specs=[x_spec, w_spec,
                  pl.BlockSpec((2, C_out_pad, 1), lambda n, j: (0, 0, 0))],
        out_specs=pl.BlockSpec((1, C_out_pad, TL), lambda n, j: (n, 0, j)),
        out_shape=jax.ShapeDtypeStruct((N, C_out_pad, L_out_pad), out_dtype),
        compiler_params=pltpu.CompilerParams(
            dimension_semantics=("parallel", "parallel"),
            vmem_limit_bytes=budget),
        cost_estimate=pl.CostEstimate(
            flops=flops, transcendentals=0,
            bytes_accessed=x_bytes + w_bytes + 2 * C_out_pad * 4
            + N * C_out_pad * L_out_pad * out_b),
    )(x_sub, w, affine)

    # Trim padding only -- already in PyTorch's (N, C_out, L_out) layout.
    return out[:, :C_out, :L_out]


def conv_block_ref(x, weight, gamma, beta, *, stride=2, padding=1, dilation=2):
    """Pure-JAX reference mirroring the PyTorch forward (training-mode BN)."""
    y = lax.conv_general_dilated(
        x, weight,
        window_strides=(stride,),
        padding=[(padding, padding)],
        rhs_dilation=(dilation,),
        dimension_numbers=("NCH", "OIH", "NCH"),
    )
    mean = jnp.mean(y, axis=(0, 2), keepdims=True)
    var = jnp.mean(jnp.square(y - mean), axis=(0, 2), keepdims=True)
    y = (y - mean) * lax.rsqrt(var + EPS)
    y = y * gamma[None, :, None] + beta[None, :, None]
    return jnp.maximum(y, 0.0)


if __name__ == "__main__":
    # Conv1d(in_channels=4, out_channels=8, kernel_size=3, stride=2, padding=1,
    #        dilation=2, bias=False) -> BatchNorm1d(8) -> ReLU
    N, C_in, L = 2, 4, 16
    C_out, K = 8, 3

    key = jax.random.PRNGKey(0)
    kx, kw = jax.random.split(key)
    x = jax.random.normal(kx, (N, C_in, L), dtype=jnp.float32)

    # Kaiming-normal init, mode='fan_out', nonlinearity='relu'.
    fan_out = C_out * K
    std = (2.0 / fan_out) ** 0.5
    weight = std * jax.random.normal(kw, (C_out, C_in, K), dtype=jnp.float32)

    gamma = jnp.ones((C_out,), dtype=jnp.float32)
    beta = jnp.zeros((C_out,), dtype=jnp.float32)

    ref = conv_block_ref(x, weight, gamma, beta)

    # f32 compute + f32 output: tight check against the pure-JAX reference.
    out_f32 = jax.block_until_ready(
        conv_block_forward(x, weight, gamma, beta, compute_dtype=jnp.float32))
    assert out_f32.shape == ref.shape == (N, C_out, 7), out_f32.shape
    assert jnp.allclose(out_f32, ref, atol=1e-4, rtol=1e-4), "f32 path mismatch"

    # Default perf config: bf16 MXU inputs, f32 accumulation, bf16 output.
    out_bf16 = jax.block_until_ready(conv_block_forward(x, weight, gamma, beta))
    assert out_bf16.shape == ref.shape
    assert jnp.allclose(out_bf16.astype(jnp.float32), ref,
                        atol=5e-2, rtol=5e-2), "bf16 path mismatch"

    print("KERNEL_OK")
</pallas_src>

<mosaic_0001>
module attributes {stable_mosaic.version = 11 : i64} {
  func.func @_stats_kernel(%arg0: i32, %arg1: i32, %arg2: memref<1x8x256xf32, #tpu.memory_space<vmem>>, %arg3: memref<3x8x8xf32, #tpu.memory_space<vmem>>, %arg4: memref<1x1x8x1xf32, #tpu.memory_space<vmem>>, %arg5: memref<1x1x8x1xf32, #tpu.memory_space<vmem>>) attributes {dimension_semantics = [#tpu.dimension_semantics<parallel>, #tpu.dimension_semantics<parallel>], iteration_bounds = array<i64: 2, 1>, scalar_prefetch = 0 : i64, scratch_operands = 0 : i64, tpu.core_type = #tpu.core_type<tc>, window_params = [{transform_indices = @transform_0, window_bounds = array<i64: 1, 8, 256>}, {pipeline_mode = #tpu.pipeline_mode<synchronous>, transform_indices = @transform_1, window_bounds = array<i64: 3, 8, 8>}, {transform_indices = @transform_2, window_bounds = array<i64: 1, 1, 8, 1>}, {transform_indices = @transform_3, window_bounds = array<i64: 1, 1, 8, 1>}]} {
    %c0 = arith.constant 0 : index
    %c0_0 = arith.constant 0 : index
    %c0_1 = arith.constant 0 : index
    %0 = vector.load %arg2[%c0, %c0_0, %c0_1] : memref<1x8x256xf32, #tpu.memory_space<vmem>>, vector<1x8x128xf32>
    %1 = vector.shape_cast %0 : vector<1x8x128xf32> to vector<8x128xf32>
    %c0_2 = arith.constant 0 : index
    %c0_3 = arith.constant 0 : index
    %c0_4 = arith.constant 0 : index
    %2 = vector.load %arg3[%c0_2, %c0_3, %c0_4] : memref<3x8x8xf32, #tpu.memory_space<vmem>>, vector<1x8x8xf32>
    %3 = vector.shape_cast %2 : vector<1x8x8xf32> to vector<8x8xf32>
    %cst = arith.constant dense<0.000000e+00> : vector<8x128xf32>
    %4 = tpu.matmul %3, %1, %cst {dimension_numbers = #tpu.dot_dimension_numbers<[1], [0], [0], [1], [0, 0, 1, 1], [], []>} : vector<8x8xf32>, vector<8x128xf32>, vector<8x128xf32> -> vector<8x128xf32>
    %c0_5 = arith.constant 0 : index
    %c0_6 = arith.constant 0 : index
    %c1 = arith.constant 1 : index
    %5 = vector.load %arg2[%c0_5, %c0_6, %c1] : memref<1x8x256xf32, #tpu.memory_space<vmem>>, vector<1x8x128xf32>
    %6 = vector.shape_cast %5 : vector<1x8x128xf32> to vector<8x128xf32>
    %c1_7 = arith.constant 1 : index
    %c0_8 = arith.constant 0 : index
    %c0_9 = arith.constant 0 : index
    %7 = vector.load %arg3[%c1_7, %c0_8, %c0_9] : memref<3x8x8xf32, #tpu.memory_space<vmem>>, vector<1x8x8xf32>
    %8 = vector.shape_cast %7 : vector<1x8x8xf32> to vector<8x8xf32>
    %cst_10 = arith.constant dense<0.000000e+00> : vector<8x128xf32>
    %9 = tpu.matmul %8, %6, %cst_10 {dimension_numbers = #tpu.dot_dimension_numbers<[1], [0], [0], [1], [0, 0, 1, 1], [], []>} : vector<8x8xf32>, vector<8x128xf32>, vector<8x128xf32> -> vector<8x128xf32>
    %10 = arith.addf %4, %9 : vector<8x128xf32>
    %c0_11 = arith.constant 0 : index
    %c0_12 = arith.constant 0 : index
    %c2 = arith.constant 2 : index
    %11 = vector.load %arg2[%c0_11, %c0_12, %c2] : memref<1x8x256xf32, #tpu.memory_space<vmem>>, vector<1x8x128xf32>
    %12 = vector.shape_cast %11 : vector<1x8x128xf32> to vector<8x128xf32>
    %c2_13 = arith.constant 2 : index
    %c0_14 = arith.constant 0 : index
    %c0_15 = arith.constant 0 : index
    %13 = vector.load %arg3[%c2_13, %c0_14, %c0_15] : memref<3x8x8xf32, #tpu.memory_space<vmem>>, vector<1x8x8xf32>
    %14 = vector.shape_cast %13 : vector<1x8x8xf32> to vector<8x8xf32>
    %cst_16 = arith.constant dense<0.000000e+00> : vector<8x128xf32>
    %15 = tpu.matmul %14, %12, %cst_16 {dimension_numbers = #tpu.dot_dimension_numbers<[1], [0], [0], [1], [0, 0, 1, 1], [], []>} : vector<8x8xf32>, vector<8x128xf32>, vector<8x128xf32> -> vector<8x128xf32>
    %16 = arith.addf %10, %15 : vector<8x128xf32>
    %17 = tpu.iota {dimensions = array<i32: 1>} : vector<1x128xi32>
    %c7_i32 = arith.constant 7 : i32
    %18 = vector.broadcast %c7_i32 : i32 to vector<1x128xi32>
    %19 = arith.cmpi slt, %17, %18 : vector<1x128xi32>
    %20 = arith.extui %19 : vector<1x128xi1> to vector<1x128xi32>
    %21 = arith.sitofp %20 : vector<1x128xi32> to vector<1x128xf32>
    %22 = vector.shape_cast %21 : vector<1x128xf32> to vector<1x1x128xf32>
    %cst_17 = arith.constant dense<0.000000e+00> : vector<1xf32>
    %23 = vector.multi_reduction <add>, %22, %cst_17 [1, 2] : vector<1x1x128xf32> to vector<1xf32>
    %24 = vector.shape_cast %23 : vector<1xf32> to vector<1x1x1xf32>
    %25 = vector.extract %24[0, 0, 0] : f32 from vector<1x1x1xf32>
    %26 = vector.broadcast %21 : vector<1x128xf32> to vector<8x128xf32>
    %27 = arith.mulf %16, %26 : vector<8x128xf32>
    %cst_18 = arith.constant dense<0.000000e+00> : vector<8xf32>
    %28 = vector.multi_reduction <add>, %27, %cst_18 [1] : vector<8x128xf32> to vector<8xf32>
    %29 = vector.shape_cast %28 : vector<8xf32> to vector<8x1xf32>
    %30 = vector.broadcast %25 : f32 to vector<8x1xf32>
    %31 = arith.divf %29, %30 : vector<8x1xf32>
    %32 = vector.broadcast %31 : vector<8x1xf32> to vector<8x128xf32>
    %33 = arith.subf %16, %32 : vector<8x128xf32>
    %34 = vector.broadcast %21 : vector<1x128xf32> to vector<8x128xf32>
    %35 = arith.mulf %33, %34 : vector<8x128xf32>
    %36 = arith.mulf %35, %35 : vector<8x128xf32>
    %cst_19 = arith.constant dense<0.000000e+00> : vector<8xf32>
    %37 = vector.multi_reduction <add>, %36, %cst_19 [1] : vector<8x128xf32> to vector<8xf32>
    %38 = vector.shape_cast %37 : vector<8xf32> to vector<8x1xf32>
    %c0_20 = arith.constant 0 : index
    %c0_21 = arith.constant 0 : index
    %c0_22 = arith.constant 0 : index
    %c0_23 = arith.constant 0 : index
    %39 = vector.load %arg4[%c0_20, %c0_21, %c0_22, %c0_23] : memref<1x1x8x1xf32, #tpu.memory_space<vmem>>, vector<1x1x8x1xf32>
    %40 = vector.shape_cast %39 : vector<1x1x8x1xf32> to vector<8x1xf32>
    %41 = vector.shape_cast %31 : vector<8x1xf32> to vector<1x1x8x1xf32>
    tpu.vector_store %arg4[%c0_20, %c0_21, %c0_22, %c0_23], %41 {strides = array<i32>} : memref<1x1x8x1xf32, #tpu.memory_space<vmem>>, vector<1x1x8x1xf32>,
    %c0_24 = arith.constant 0 : index
    %c0_25 = arith.constant 0 : index
    %c0_26 = arith.constant 0 : index
    %c0_27 = arith.constant 0 : index
    %42 = vector.load %arg5[%c0_24, %c0_25, %c0_26, %c0_27] : memref<1x1x8x1xf32, #tpu.memory_space<vmem>>, vector<1x1x8x1xf32>
    %43 = vector.shape_cast %42 : vector<1x1x8x1xf32> to vector<8x1xf32>
    %44 = vector.shape_cast %38 : vector<8x1xf32> to vector<1x1x8x1xf32>
    tpu.vector_store %arg5[%c0_24, %c0_25, %c0_26, %c0_27], %44 {strides = array<i32>} : memref<1x1x8x1xf32, #tpu.memory_space<vmem>>, vector<1x1x8x1xf32>,
    return
  }
  func.func @transform_0(%arg0: i32, %arg1: i32) -> (i32, i32, i32) {
    %c0_i32 = arith.constant 0 : i32
    %c0_i32_0 = arith.constant 0 : i32
    %c0_i32_1 = arith.constant 0 : i32
    return %arg0, %c0_i32, %c0_i32_0 : i32, i32, i32
  }
  func.func @transform_1(%arg0: i32, %arg1: i32) -> (i32, i32, i32) {
    %c0_i32 = arith.constant 0 : i32
    %c0_i32_0 = arith.constant 0 : i32
    %c0_i32_1 = arith.constant 0 : i32
    %c0_i32_2 = arith.constant 0 : i32
    return %c0_i32, %c0_i32_0, %c0_i32_1 : i32, i32, i32
  }
  func.func @transform_2(%arg0: i32, %arg1: i32) -> (i32, i32, i32, i32) {
    %c0_i32 = arith.constant 0 : i32
    %c0_i32_0 = arith.constant 0 : i32
    %c0_i32_1 = arith.constant 0 : i32
    return %arg0, %arg1, %c0_i32, %c0_i32_0 : i32, i32, i32, i32
  }
  func.func @transform_3(%arg0: i32, %arg1: i32) -> (i32, i32, i32, i32) {
    %c0_i32 = arith.constant 0 : i32
    %c0_i32_0 = arith.constant 0 : i32
    %c0_i32_1 = arith.constant 0 : i32
    return %arg0, %arg1, %c0_i32, %c0_i32_0 : i32, i32, i32, i32
  }
}

</mosaic_0001>

<bundles_post_ra>
// kernel: tpu_custom_call.1
= control target key start
LH: loop header
LB: loop body
LE: loop exit
PB: predicated region body
PF: predicated region fallthrough
CT: control target
= control target key end

     0   :  { %9 = vsyncpa [#allocation3], 0  ;;  %s1035_s0 = inlined_call_operand.hbm [shape: f32[2,8,256], index: 0, kind: input, shape index: {}]   ;;  %s1036_s1 = inlined_call_operand.hbm [shape: f32[3,8,8], index: 1, kind: input, shape index: {}]   ;;  %s1037_s2 = inlined_call_operand.vmem [shape: f32[2,1,8,1], index: 2, kind: output, shape index: {0}]   ;;  %s1038_s3 = inlined_call_operand.vmem [shape: f32[2,1,8,1], index: 3, kind: output, shape index: {1}]  }
   0x1   :  { %11 = vsyncpa [#allocation3 + $0x1], 0 }
   0x2   :  { %12 = vsyncpa [#allocation5], 0  ;;  %s905_s12 = smov 0   ;;  %s907_s13 = smov 0  }
   0x3   :  { %s909_s14 = smov 0   ;;  %s911_s15 = smov 0  }
   0x4   :  { %s913_s16 = smov 0   ;;  %s915_s17 = smov 0  }
   0x5 LB: > { %s650_s18 = sadd.s32 4294967295, %s875_s17   ;;  %p50_p0 = scmp.ne.s32.totalorder %s859_s13, %s855_s12  ;;  %s875_s17 = sphi %s915_s17, %s18_s17   ;;  %s871_s16 = sphi %s913_s16, %s1048_s16   ;;  %s867_s15 = sphi %s911_s15, %s1047_s15   ;;  %s863_s14 = sphi %s909_s14, %s1046_s14   ;;  %s859_s13 = sphi %s907_s13, %s1045_s13   ;;  %s855_s12 = sphi %s905_s12, %s1044_s12  }
   0x6   : > { %p935_p1 = scmp.eq.s32.totalorder %s650_s18, 0  ;;  %p652_p2 = scmp.ge.s32.totalorder %s875_s17, 1 }
   0x7   : > { %p138_p3 = scmp.lt.s32.totalorder %s875_s17, 3  ;;  %s877_s22 = smov [#allocation4]  }
   0x8   : > { %p943_p4 = por %p935_p1, %p50_p0  ;;  %s150_s23 = sshll.u32 %s877_s22, 4  ;;  %s151_s23 = int_to_ptr.vmem [resolvable:$true] %s150_s23 }
   0x9   : > { %p947_p5 = pnand %p652_p2, %p138_p3  ;;  %s30_s25 = sadd.s32 1, %s871_s16 }
   0xa   : > { %s778_s26 = scalar_lea.vmem %s151_s23, 384  ;;  %p786_p12 = scmp.lt.s32.totalorder %s151_s23, %s151_s23 }
   0xb   : > { %p699_p6 = pneg %p947_p5  ;;  %p779_p9 = scmp.ne.s32.totalorder %s151_s23, %s778_s26 }
   0xc   : > { %p787_p13 = scmp.lt.s32.totalorder %s778_s26, %s778_s26 }
   0xd   : > { %p955_p7 = pnand %p699_p6, %p935_p1 }
   0xe   : > { %p788_p0 = por %p787_p13, %p786_p12 }
   0xf   : > { %p769_p8 = pneg %p955_p7 }
  0x11   : > { %p781_p10 = pnand %p779_p9, %p769_p8 }
  0x13   : > { %p782_p11 = pneg %p781_p10 }
  0x15   : > { %p789_p2 = pnand %p788_p0, %p782_p11 }
  0x17   : > { %792 = shalt.err (!%p789_p2)
}
  0x18   : > { %s878_s27 = smov 128   ;;  %s879_s28 = smov 8  }
  0x19   : > { %702 = dma.hbm_to_vmem [thread:$0]  (!%p955_p7), %s1036_s1, 384, %s151_s23, [#allocation5], %s878_s27, %s878_s27, %s879_s28  }
  0x1a   : > { %p32_p3 = scmp.ge.s32.totalorder %s30_s25, 2  ;;  %s37_s4 = sadd.s32 1, %s863_s14 }
  0x1b   : > { %p44_p6 = scmp.ne.s32.totalorder %s863_s14, %s859_s13  ;;  %p45_p8 = scmp.eq.s32.totalorder %s875_s17, 0 }
  0x1c   : > { %s1050_s25 = smov (%p32_p3, %s30_s25), 0  ;;  %p708_p10 = scmp.lt.s32.totalorder %s875_s17, 2 }
  0x1d   : > { %p46_p9 = por %p45_p8, %p44_p6  ;;  %s34_s5 = ssub.s32 %s871_s16, %s1050_s25 }
  0x1e   : > { %s164_s6 = sand.u32 1, %s863_s14   ;;  %p35_p11 = scmp.eq.s32.totalorder %s34_s5, 0 }
  0x1f   : > { %s655_s7 = sshll.u32 %s164_s6, 4  ;;  %s669_s8 = sshll.u32 %s871_s16, 8 }
  0x20   : > { %s979_s9 = scalar_select %p35_p11, %s863_s14, %s37_s4  }
  0x21   : > { %s174_s12 = scalar_lea.hbm %s1035_s0, %s669_s8  ;;  %s168_s18 = scalar_lea.vmem [#allocation2], %s655_s7 }
  0x22   : > { %s176_s22 = sshll.u32 %s168_s18, 4  ;;  %p984_p7 = pnand %p708_p10, %p46_p9  ;;  %s177_s22 = int_to_ptr.vmem [resolvable:$true] %s176_s22 }
  0x23   : > { %s165_s24 = scalar_lea.sflag [#allocation3], %s164_s6  ;;  %s806_s26 = scalar_lea.vmem %s177_s22, 256 }
  0x24   : > { %p795_p12 = pneg %p984_p7  ;;  %p807_p13 = scmp.ne.s32.totalorder %s177_s22, %s806_s26 }
  0x25   : > { %s880_s27 = smov [#allocation2]  }
  0x26   : > { %p809_p0 = pnand %p807_p13, %p795_p12  ;;  %s811_s28 = sshll.u32 %s880_s27, 4  ;;  %s812_s28 = int_to_ptr.vmem [resolvable:$false] %s811_s28 }
  0x27   : > { %s813_s29 = scalar_lea.vmem %s812_s28, 512  ;;  %p814_p3 = scmp.lt.s32.totalorder %s177_s22, %s812_s28 }
  0x28   : > { %p810_p2 = pneg %p809_p0  ;;  %p815_p6 = scmp.lt.s32.totalorder %s813_s29, %s806_s26 }
  0x2a   : > { %p816_p8 = por %p815_p6, %p814_p3 }
  0x2c   : > { %p817_p9 = pnand %p816_p8, %p810_p2 }
  0x2e   : > { %820 = shalt.err (!%p817_p9)
}
  0x2f   : > { %706 = dma.hbm_to_vmem [thread:$0]  (!%p984_p7), %s174_s12, 256, %s177_s22, %s165_s24  }
  0x30   : > { %185 = sbr.rel (%p947_p5) target bundleno = 666 (0x29a), region = 28  ;;  %s187_s30 = sand.u32 (!%p947_p5), 1, %s859_s13  }
  0x31   : > { %s659_s4 = sshll.u32 (!%p947_p5), %s187_s30, 4  ;;  %s188_s5 = scalar_lea.sflag (!%p947_p5), [#allocation3], %s187_s30 }
  0x32   : > { %s191_s6 = scalar_lea.vmem (!%p947_p5), [#allocation2], %s659_s4 }
  0x35   : > { %846 = dma.done.wait (%p943_p4), %s188_s5, 256  }
  0x36   : > { %848 = vsyncadd (%p943_p4), %s188_s5, 4294967040 }
  0x37   : > { %850 = dma.done.wait (%p935_p1), [#allocation5], 384  }
  0x38   : > { %852 = vsyncadd (%p935_p1), [#allocation5], 4294966912  ;;  %v881_v0 = vmov 0.0   ;;  %vm882_vm0 = vmmov 0   ;;  %v243_v1 = vld [vmem:[%s191_s6] sm:$0xff]  ;;  %vm256_vm1 = vcmask 64512   ;;  %v486_v4 = vlaneseq }
  0x39   : > { %676 = vmatprep.subr.mxu0 %v881_v0  ;;  %681 = vmatprep.subr.mxu1 %v881_v0  ;;  %s883_s21 = smov 126   ;;  %s884_s20 = smov 127   ;;  %v242_v2 = vld [vmem:[#allocation4] sm:$0xff]  ;;  %v244_v3 = vld [vmem:[%s191_s6 + $0x8] sm:$0xff]  ;;  %vm491_vm3 = vcmask 1040384   ;;  %vm253_vm4 = vcmask 1039360  }
  0x3a   : > { %678 = vmatprep.mubr.msk.f32.mxu0 %vm882_vm0, %v881_v0  ;;  %683 = vmatprep.mubr.msk.f32.mxu1 %vm882_vm0, %v881_v0  ;;  %v487_v5 = vand.u32 127, %v486_v4  ;;  %vm409_vm5 = vcmask 1031168   ;;  %v246_v12 = vld [vmem:[#allocation4 + $0x8] sm:$0xff]  ;;  %v404_v15 = vld [vmem:[#allocation4 + $0x10] sm:$0xff]  ;;  %p227_p1 = scmp.lt.s32.totalorder %s867_s15, 1  ;;  %vm513_vm6 = vcmask 7168  }
  0x3b   : > { %405 = vrot.lane.b32.xlu1 %v243_v1, %s883_s21  ;;  %249 = vrot.lane.b32.xlu0 %v243_v1, %s884_s20 }
  0x3c   : > { %682 = vmatpush3.msra.mxu1 %v243_v1  ;;  %vm488_vm2 = vcmp.lt.s32.totalorder %v487_v5, 7  ;;  %s1052_s15 = smov (!%p227_p1, %s867_s15), 1 }
  0x3d   : > { %684 = vmatmul.mubr.msk.f32.vlgmr.msra.gmra.mxu1 %vm256_vm1, %v242_v2  ;;  %v666_v6 = vsel %vm488_vm2, 1.0, %v881_v0  ;;  %s661_s7 = sshll.u32 %s1052_s15, 3 }
  0x3e   : > { %v492_v7 = vsel %vm491_vm3, %v666_v6, 0.0  ;;  %s233_s11 = scalar_lea.vmem %s1037_s2, %s661_s7  ;;  %s240_s22 = scalar_lea.vmem %s1038_s3, %s661_s7 }
  0x3f   : > { %407 = vrot.lane.b32.xlu1 %v244_v3, %s883_s21  ;;  %251 = vrot.lane.b32.xlu0 %v244_v3, %s884_s20 }
  0x5e   : > { %493 = vadd.xlane.f32.xlu0 %v492_v7 }
  0xad   : > { %v406_v8 = vpop.permute.xlu1 %405  ;;  %v250_v9 = vpop.permute.xlu0 %249 }
  0xb1   : > { %v408_v10 = vpop.permute.xlu1 %407  ;;  %v252_v11 = vpop.permute.xlu0 %251 }
  0xb2   : > { %v254_v13 = vsel %vm253_vm4, %v250_v9, %v252_v11  ;;  %v410_v14 = vsel %vm409_vm5, %v406_v8, %v408_v10 }
  0xb3   : > { %677 = vmatpush3.msra.mxu0 %v254_v13 }
  0xb4   : > { %679 = vmatmul.mubr.msk.f32.vlgmr.msra.gmra.mxu0 %vm256_vm1, %v246_v12  ;;  %686 = vmatprep.subr.mxu0 %v881_v0 }
  0xb5   : > { %687 = vmatpush3.msra.mxu0 %v410_v14  ;;  %688 = vmatprep.mubr.msk.f32.mxu0 %vm882_vm0, %v881_v0 }
  0xb8   : > { %689 = vmatmul.mubr.msk.f32.vlgmr.msra.gmra.mxu0 %vm256_vm1, %v404_v15 }
  0xe7   : > { %v494_v17 = vpop.xlane.xlu0 %493 }
  0xe8   : > { %v495_v18 = vrot.slane %v494_v17, 4 }
  0xea   : > { %v496_v20 = vadd.f32 %v495_v18, %v494_v17 }
  0xec   : > { %v497_v21 = vrot.slane %v496_v20, 2 }
  0xee   : > { %v498_v22 = vadd.f32 %v497_v21, %v496_v20 }
  0xf0   : > { %v499_v23 = vrot.slane %v498_v22, 1 }
  0xf2   : > { %v500_v24 = vadd.f32 %v499_v23, %v498_v22 }
  0xf4   : > { %691 = vpush %v500_v24 }
  0xfd   : > { %v399_v16 = vpop.f32.mrf.mxu1 }
  0xff   : > { %v685_v19 = vpop.f32.mrf.mxu1 }
 0x125   : > { %s692_s19 = spop %691 }
 0x126   : > { %v505_v32 = vstv %s692_s19 }
 0x127   : > { %765 = vrcp.f32 %v505_v32 }
 0x134   : > { %v766_v33 = vpop.eup %765 }
 0x174   : > { %v326_v25 = vpop.f32.mrf.mxu0 }
 0x175   : > { %v400_v27 = vadd.f32 %v399_v16, %v326_v25 }
 0x176   : > { %v680_v26 = vpop.f32.mrf.mxu0 }
 0x178   : > { %v481_v28 = vpop.f32.mrf.mxu0 }
 0x179   : > { %v485_v29 = vadd.f32 %v481_v28, %v400_v27 }
 0x17a   : > { %v690_v30 = vpop.f32.mrf.mxu0 }
 0x17b   : > { %v502_v31 = vmul.f32 %v666_v6, %v485_v29 }
 0x17d   : > { %503 = vadd.xlane.f32.xlu1 %v502_v31 }
 0x206   : > { %v504_v34 = vpop.xlane.xlu1 %503 }
 0x207   : > { %v507_v35 = vmul.f32 %v766_v33, %v504_v34 }
 0x209   : > { %v508_v36 = vsub.f32 %v485_v29, %v507_v35  ;;  %514 = vst.msk [vmem:[%s233_s11] sm:$0xff] %vm513_vm6, %v507_v35 }
 0x20b   : > { %v509_v37 = vmul.f32 %v666_v6, %v508_v36 }
 0x20d   : > { %v510_v38 = vmul.f32 %v509_v37, %v509_v37 }
 0x20f   : > { %511 = vadd.xlane.f32.xlu0 %v510_v38 }
 0x298   : > { %v512_v39 = vpop.xlane.xlu0 %511 }
 0x299   : > { %515 = vst.msk [vmem:[%s240_s22] sm:$0xff] %vm513_vm6, %v512_v39 }
 0x29a PF: > { %s18_s17 = sadd.s32 1, %s875_s17   ;;  %s1044_s12 = smov %s859_s13 }
 0x29b   : > { %p15_p4 = scmp.ge.s32.totalorder %s18_s17, 4   ;;  %s1045_s13 = smov %s863_s14 }
 0x29c   : > { %s1046_s14 = smov %s979_s9  ;;  %s1047_s15 = smov %s871_s16 }
 0x29d   : > { %s1048_s16 = smov %s1050_s25  ;;  %17 = sbr.rel (!%p15_p4) target bundleno = 5 (0x5), region = 86 }
 0x2a2   :  { %561 = vsyncpa [#allocation3], 1 }
 0x2a3   :  { %563 = vsyncpa [#allocation3 + $0x1], 1 }
 0x2a4   :  { %564 = vsyncpa [#allocation5], 1 }

</bundles_post_ra>
